<compile_context>
chip_gen: v5e
topology: v5e:2x2
jax: 0.10.0
libtpu: 0.0.40
codegen_flags: <defaults>
</compile_context>

<pallas_src>
import jax
import jax.numpy as jnp
from jax.experimental import pallas as pl
from jax.experimental.pallas import tpu as pltpu


_LANE = 128
_MAX_TILE_N = 2048                      # ~86% of HBM roofline; diminishing returns beyond
_VMEM_BUDGET_BYTES = 16 * 1024 * 1024   # target for double-buffered in+out block footprint
_VMEM_LIMIT_BYTES = 32 * 1024 * 1024    # safe on v5e/v6e (128 MiB) and v7x (64 MiB physical)


def _softmax_rows_kernel(x_ref, o_ref):
    # x_ref / o_ref: (R, tile_n).  Numerically stable softmax over the sublane (R)
    # axis, independently per lane.
    x = x_ref[...].astype(jnp.float32)
    m = jnp.max(x, axis=0, keepdims=True)
    e = jnp.exp(x - m)
    s = jnp.sum(e, axis=0, keepdims=True)
    # One EUP vrcp + a single Newton-Raphson refine on the VPU (per-row only, so cheap)
    # instead of an exact divide: keeps EUP pressure minimal (v7x) at full f32 accuracy.
    r = pl.reciprocal(s, approx=True)
    r = r * (2.0 - s * r)
    o_ref[...] = (e * r).astype(o_ref.dtype)


def _pick_tile_n(N, R):
    """Largest lane tile (multiple of 128) whose double-buffered in+out footprint fits VMEM."""
    if N <= _LANE:
        return N                                    # small lane dim: single full-width block
    per_lane_col_bytes = 2 * 2 * R * 4              # (in + out) x 2 buffers x R rows x f32
    t = (_VMEM_BUDGET_BYTES // per_lane_col_bytes) // _LANE * _LANE
    t = max(_LANE, min(_MAX_TILE_N, t))
    t = min(t, (N // _LANE) * _LANE)                # never exceed the array's lane extent
    return t


def _softmax_rows(x3d, out_dtype):
    """Softmax over axis 1 of a (G, R, N) array, tiled over (G, lane tiles)."""
    G, R, N = x3d.shape
    tile_n = _pick_tile_n(N, R)
    grid = (G, pl.cdiv(N, tile_n))
    spec = pl.BlockSpec((None, R, tile_n), lambda g, j: (g, 0, j))
    return pl.pallas_call(
        _softmax_rows_kernel,
        out_shape=jax.ShapeDtypeStruct((G, R, N), out_dtype),
        grid_spec=pltpu.PrefetchScalarGridSpec(
            num_scalar_prefetch=0,
            grid=grid,
            in_specs=[spec],
            out_specs=spec,
        ),
        compiler_params=pltpu.CompilerParams(
            dimension_semantics=("parallel", "parallel"),
            vmem_limit_bytes=_VMEM_LIMIT_BYTES,
        ),
    )(x3d)


class SoftmaxComplex:
    """JAX/Pallas port of the PyTorch SoftmaxComplex module (parameter-free)."""

    def __call__(self, x):
        return self.forward(x)

    def forward(self, x):
        B, C, Fq, T = x.shape
        N = Fq * T
        if jnp.issubdtype(x.dtype, jnp.complexfloating):
            # torch: Softmax2d(abs(x.view(B*C, F, T))) -> softmax over the B*C axis
            # per spatial location.  jnp.abs(complex64) is a single fused, hypot-safe
            # XLA elementwise pass; the kernel then streams one f32 array.
            mag = jnp.abs(x).astype(jnp.float32).reshape(1, B * C, N)
            out = _softmax_rows(mag, jnp.float32)
            return out.reshape(B, C, Fq, T)
        # Real path: nn.Softmax2d on NCHW == softmax over the channel axis.
        out = _softmax_rows(x.reshape(B, C, N), x.dtype)
        return out.reshape(B, C, Fq, T)


if __name__ == "__main__":
    key = jax.random.PRNGKey(0)
    k_re, k_im, k_real = jax.random.split(key, 3)

    B, C, Fq, T = 2, 4, 16, 16
    mod = SoftmaxComplex()

    # --- complex64 input path ---
    re = jax.random.normal(k_re, (B, C, Fq, T), dtype=jnp.float32)
    im = jax.random.normal(k_im, (B, C, Fq, T), dtype=jnp.float32)
    x_c = (re + 1j * im).astype(jnp.complex64)

    out_c = jax.block_until_ready(jax.jit(mod.forward)(x_c))

    mag_ref = jnp.abs(x_c).reshape(B * C, Fq, T)
    ref_c = jax.nn.softmax(mag_ref, axis=0).reshape(B, C, Fq, T)
    assert out_c.shape == (B, C, Fq, T) and out_c.dtype == jnp.float32
    assert jnp.allclose(out_c, ref_c, atol=1e-4, rtol=1e-4)
    # softmax over B*C must sum to 1 per spatial location
    assert jnp.allclose(out_c.reshape(B * C, Fq, T).sum(axis=0), 1.0, atol=1e-3)

    # --- real (float32) input path ---
    x_r = jax.random.normal(k_real, (B, C, Fq, T), dtype=jnp.float32)
    out_r = jax.block_until_ready(jax.jit(mod.forward)(x_r))
    ref_r = jax.nn.softmax(x_r, axis=1)
    assert out_r.shape == (B, C, Fq, T) and out_r.dtype == jnp.float32
    assert jnp.allclose(out_r, ref_r, atol=1e-4, rtol=1e-4)
    assert jnp.allclose(out_r.sum(axis=1), 1.0, atol=1e-3)

    print("KERNEL_OK")
</pallas_src>

<mosaic_0001>
module attributes {stable_mosaic.version = 11 : i64} {
  func.func @_softmax_rows_kernel(%arg0: i32, %arg1: i32, %arg2: memref<1x8x256xf32, #tpu.memory_space<vmem>>, %arg3: memref<1x8x256xf32, #tpu.memory_space<vmem>>) attributes {dimension_semantics = [#tpu.dimension_semantics<parallel>, #tpu.dimension_semantics<parallel>], iteration_bounds = array<i64: 1, 1>, scalar_prefetch = 0 : i64, scratch_operands = 0 : i64, tpu.core_type = #tpu.core_type<tc>, window_params = [{transform_indices = @transform_0, window_bounds = array<i64: 1, 8, 256>}, {transform_indices = @transform_1, window_bounds = array<i64: 1, 8, 256>}]} {
    %c0 = arith.constant 0 : index
    %c0_0 = arith.constant 0 : index
    %c0_1 = arith.constant 0 : index
    %0 = vector.load %arg2[%c0, %c0_0, %c0_1] : memref<1x8x256xf32, #tpu.memory_space<vmem>>, vector<1x8x256xf32>
    %1 = vector.shape_cast %0 : vector<1x8x256xf32> to vector<8x256xf32>
    %cst = arith.constant dense<0xFF800000> : vector<256xf32>
    %2 = vector.multi_reduction <maximumf>, %1, %cst [0] : vector<8x256xf32> to vector<256xf32>
    %3 = vector.shape_cast %2 : vector<256xf32> to vector<1x256xf32>
    %4 = vector.broadcast %3 : vector<1x256xf32> to vector<8x256xf32>
    %5 = arith.subf %1, %4 : vector<8x256xf32>
    %6 = math.exp %5 : vector<8x256xf32>
    %cst_2 = arith.constant dense<0.000000e+00> : vector<256xf32>
    %7 = vector.multi_reduction <add>, %6, %cst_2 [0] : vector<8x256xf32> to vector<256xf32>
    %8 = vector.shape_cast %7 : vector<256xf32> to vector<1x256xf32>
    %9 = tpu.reciprocal %8 {approx = true} : vector<1x256xf32> -> vector<1x256xf32>
    %10 = arith.mulf %8, %9 : vector<1x256xf32>
    %cst_3 = arith.constant 2.000000e+00 : f32
    %11 = vector.broadcast %cst_3 : f32 to vector<1x256xf32>
    %12 = arith.subf %11, %10 : vector<1x256xf32>
    %13 = arith.mulf %9, %12 : vector<1x256xf32>
    %14 = vector.broadcast %13 : vector<1x256xf32> to vector<8x256xf32>
    %15 = arith.mulf %6, %14 : vector<8x256xf32>
    %c0_4 = arith.constant 0 : index
    %c0_5 = arith.constant 0 : index
    %c0_6 = arith.constant 0 : index
    %16 = vector.load %arg3[%c0_4, %c0_5, %c0_6] : memref<1x8x256xf32, #tpu.memory_space<vmem>>, vector<1x8x256xf32>
    %17 = vector.shape_cast %16 : vector<1x8x256xf32> to vector<8x256xf32>
    %18 = vector.shape_cast %15 : vector<8x256xf32> to vector<1x8x256xf32>
    tpu.vector_store %arg3[%c0_4, %c0_5, %c0_6], %18 {strides = array<i32>} : memref<1x8x256xf32, #tpu.memory_space<vmem>>, vector<1x8x256xf32>,
    return
  }
  func.func @transform_0(%arg0: i32, %arg1: i32) -> (i32, i32, i32) {
    %c0_i32 = arith.constant 0 : i32
    %c0_i32_0 = arith.constant 0 : i32
    return %arg0, %c0_i32, %arg1 : i32, i32, i32
  }
  func.func @transform_1(%arg0: i32, %arg1: i32) -> (i32, i32, i32) {
    %c0_i32 = arith.constant 0 : i32
    %c0_i32_0 = arith.constant 0 : i32
    return %arg0, %c0_i32, %arg1 : i32, i32, i32
  }
}

</mosaic_0001>

<bundles_post_ra>
// kernel: custom-call.1
= control target key start
LH: loop header
LB: loop body
LE: loop exit
PB: predicated region body
PF: predicated region fallthrough
CT: control target
= control target key end

     0   :  { %s56_s0 = inlined_call_operand.hbm [shape: c64[2,4,16,16], index: 0, kind: input, shape index: {}]   ;;  %s57_s1 = inlined_call_operand.vmem [shape: f32[2,4,16,16], index: 1, kind: output, shape index: {}]  }
   0x1   :  { %s2_s8 = scalar_lea.hbm %s56_s0, 128 }
   0x2   :  { %3 = vsyncpa [#allocation0], 0  ;;  %s5_s9 = sshll.u32 %s2_s8, 4  ;;  %s7_s12 = sshll.u32 %s57_s1, 4  ;;  %s6_s9 = int_to_ptr.hbm [resolvable:$true] %s5_s9  ;;  %s8_s12 = int_to_ptr.vmem [resolvable:$true] %s7_s12 }
   0x3   :  { %10 = dma.hbm_to_vmem [thread:$0]  %s6_s9, 2048, %s8_s12, [#allocation0] }
   0x4   :  { %38 = dma.done.wait [#allocation0], 2048  }
   0x5   :  { %39 = vsyncadd [#allocation0], 4294965248 }
   0x6   :  { %13 = vsyncpa [#allocation0], 1 }

// kernel: custom-call
= control target key start
LH: loop header
LB: loop body
LE: loop exit
PB: predicated region body
PF: predicated region fallthrough
CT: control target
= control target key end

     0   :  { %2 = vsyncpa [#allocation0], 0  ;;  %s55_s0 = inlined_call_operand.hbm [shape: c64[2,4,16,16], index: 0, kind: input, shape index: {}]   ;;  %s56_s1 = inlined_call_operand.vmem [shape: f32[2,4,16,16], index: 1, kind: output, shape index: {}]  }
   0x1   :  { %s4_s8 = sshll.u32 %s55_s0, 4  ;;  %s6_s11 = sshll.u32 %s56_s1, 4  ;;  %s5_s8 = int_to_ptr.hbm [resolvable:$true] %s4_s8  ;;  %s7_s11 = int_to_ptr.vmem [resolvable:$true] %s6_s11 }
   0x2   :  { %9 = dma.hbm_to_vmem [thread:$0]  %s5_s8, 2048, %s7_s11, [#allocation0] }
   0x3   :  { %37 = dma.done.wait [#allocation0], 2048  }
   0x4   :  { %38 = vsyncadd [#allocation0], 4294965248 }
   0x5   :  { %12 = vsyncpa [#allocation0], 1 }

// kernel: forward.1
= control target key start
LH: loop header
LB: loop body
LE: loop exit
PB: predicated region body
PF: predicated region fallthrough
CT: control target
= control target key end

     0   :  { %s86_s0 = inlined_call_operand.vmem [shape: f32[1,8,256], index: 0, kind: input, shape index: {}]   ;;  %s87_s1 = inlined_call_operand.vmem [shape: f32[1,8,256], index: 1, kind: output, shape index: {}]  }
   0x1   :  { %v8_v0 = vld [vmem:[%s86_s0] sm:$0xff]  ;;  %v9_v1 = vld [vmem:[%s86_s0 + $0x8] sm:$0xff] }
   0x2   :  { %v10_v2 = vrot.slane %v8_v0, 4  ;;  %v16_v3 = vrot.slane %v9_v1, 4 }
   0x4   :  { %v11_v4 = vmax.f32 %v8_v0, %v10_v2  ;;  %v17_v5 = vmax.f32 %v9_v1, %v16_v3 }
   0x6   :  { %v12_v6 = vrot.slane %v11_v4, 2  ;;  %v18_v7 = vrot.slane %v17_v5, 2 }
   0x8   :  { %v13_v8 = vmax.f32 %v11_v4, %v12_v6  ;;  %v19_v9 = vmax.f32 %v17_v5, %v18_v7 }
   0xa   :  { %v14_v10 = vrot.slane %v13_v8, 1  ;;  %v20_v11 = vrot.slane %v19_v9, 1 }
   0xc   :  { %v15_v12 = vmax.f32 %v13_v8, %v14_v10  ;;  %v21_v13 = vmax.f32 %v19_v9, %v20_v11 }
   0xe   :  { %v22_v14 = vsub.f32 %v8_v0, %v15_v12  ;;  %v23_v15 = vsub.f32 %v9_v1, %v21_v13 }
  0x10   :  { %v24_v16 = vmul.f32 1.442695, %v22_v14  ;;  %v26_v17 = vmul.f32 1.442695, %v23_v15 }
  0x12   :  { %56 = vpow2.f32 %v24_v16 }
  0x13   :  { %58 = vpow2.f32 %v26_v17 }
  0x18   :  { %v57_v18 = vpop.eup %56 }
  0x19   :  { %v59_v19 = vpop.eup %58  ;;  %v28_v20 = vrot.slane %v57_v18, 4 }
  0x1a   :  { %v34_v21 = vrot.slane %v59_v19, 4 }
  0x1b   :  { %v29_v22 = vadd.f32 %v57_v18, %v28_v20 }
  0x1c   :  { %v35_v23 = vadd.f32 %v59_v19, %v34_v21 }
  0x1d   :  { %v30_v24 = vrot.slane %v29_v22, 2 }
  0x1e   :  { %v36_v25 = vrot.slane %v35_v23, 2 }
  0x1f   :  { %v31_v26 = vadd.f32 %v30_v24, %v29_v22 }
  0x20   :  { %v37_v27 = vadd.f32 %v36_v25, %v35_v23 }
  0x21   :  { %v32_v28 = vrot.slane %v31_v26, 1 }
  0x22   :  { %v38_v29 = vrot.slane %v37_v27, 1 }
  0x23   :  { %v33_v30 = vadd.f32 %v32_v28, %v31_v26 }
  0x24   :  { %v39_v31 = vadd.f32 %v38_v29, %v37_v27 }
  0x25   :  { %60 = vrcp.f32 %v33_v30 }
  0x26   :  { %62 = vrcp.f32 %v39_v31 }
  0x2b   :  { %v61_v32 = vpop.eup %60 }
  0x2c   :  { %v63_v33 = vpop.eup %62  ;;  %v42_v34 = vmul.f32 %v61_v32, %v33_v30 }
  0x2d   :  { %v43_v35 = vmul.f32 %v63_v33, %v39_v31 }
  0x2e   :  { %v44_v36 = vsub.f32 2.0, %v42_v34 }
  0x2f   :  { %v45_v37 = vsub.f32 2.0, %v43_v35 }
  0x30   :  { %v46_v38 = vmul.f32 %v61_v32, %v44_v36 }
  0x31   :  { %v47_v39 = vmul.f32 %v63_v33, %v45_v37 }
  0x32   :  { %v48_v40 = vmul.f32 %v57_v18, %v46_v38 }
  0x33   :  { %v49_v41 = vmul.f32 %v59_v19, %v47_v39 }
  0x34   :  { %50 = vst [vmem:[%s87_s1] sm:$0xff] %v48_v40 }
  0x35   :  { %51 = vst [vmem:[%s87_s1 + $0x8] sm:$0xff] %v49_v41 }

</bundles_post_ra>
